<compile_context>
chip_gen: v7x
topology: tpu7x:2x2x1
jax: 0.10.0
libtpu: 0.0.40
codegen_flags: <defaults>
</compile_context>

<pallas_src>
import jax
import jax.numpy as jnp
from jax.experimental import pallas as pl
from jax.experimental.pallas import tpu as pltpu

LANE = 128  # lane width; the final layer is zero-padded to this many output columns


def critic_kernel(x_ref, w1_ref, b1_ref, w2_ref, b2_ref, w3_ref, b3_ref, out_ref):
    tm = x_ref.shape[0]
    x = x_ref[...]                                                              # (tm, D)
    h1 = jnp.dot(x, w1_ref[...], preferred_element_type=jnp.float32) + b1_ref[...]
    h1 = jnp.maximum(h1, 0.0).astype(w2_ref.dtype)                              # (tm, fc1)
    h2 = jnp.dot(h1, w2_ref[...], preferred_element_type=jnp.float32) + b2_ref[...]
    h2 = jnp.maximum(h2, 0.0).astype(w3_ref.dtype)                              # (tm, fc2)
    v = jnp.dot(h2, w3_ref[...], preferred_element_type=jnp.float32) + b3_ref[...]  # (tm, LANE)
    # Only column 0 carries the value (w3/b3 zero-padded).  The transpose rides the idle
    # XLU slot and makes the stored row lane-dense: 4 B/row of HBM writeback.
    vt = jnp.transpose(v)                                                       # (LANE, tm)
    out_ref[...] = vt[:1, :].reshape(1, 1, tm).astype(out_ref.dtype)


def _round_up(x, m):
    return ((x + m - 1) // m) * m


def _choose_tm(B):
    if B <= LANE:
        return LANE
    # Prefer >= 2 grid tiles (lights up both v7x TensorCores), cap at 1024 rows per tile.
    return min(1024, _round_up(pl.cdiv(B, 2), LANE))


def ppo_critic_forward(state, params, *, tm=None, compute_dtype=jnp.bfloat16):
    """state: (B, input_d) float32; params: dict of pre-transposed weights/biases.

    Returns the critic value, shape (B, 1), float32.
    """
    B, D = state.shape
    fc1 = params["w1"].shape[1]
    fc2 = params["w2"].shape[1]

    if tm is None:
        tm = _choose_tm(B)
    n_tiles = pl.cdiv(B, tm)

    # Activations / weights in the MXU compute dtype; biases stay f32 (added after the dot,
    # so the VPU path is f32 on all generations — v5e has no bf16 VALU).
    # In real PPO training the casts / pads below would be done once outside the rollout loop.
    x = state.astype(compute_dtype)
    w1 = params["w1"].astype(compute_dtype)
    w2 = params["w2"].astype(compute_dtype)
    b1 = params["b1"].astype(jnp.float32)
    b2 = params["b2"].astype(jnp.float32)
    # Lane-dense final layer: zero-pad last weight/bias to LANE output columns.
    w3 = jnp.pad(params["w3"], ((0, 0), (0, LANE - params["w3"].shape[1]))).astype(compute_dtype)
    b3 = jnp.pad(params["b3"], ((0, 0), (0, LANE - params["b3"].shape[1]))).astype(jnp.float32)

    itemsize = jnp.dtype(compute_dtype).itemsize
    cost = pl.CostEstimate(
        flops=2 * B * (D * fc1 + fc1 * fc2 + fc2 * LANE),
        transcendentals=0,
        bytes_accessed=(B * D * itemsize
                        + (D * fc1 + fc1 * fc2 + fc2 * LANE) * itemsize
                        + (fc1 + fc2 + LANE) * 4
                        + n_tiles * tm * 4),
    )

    out = pl.pallas_call(
        critic_kernel,
        out_shape=jax.ShapeDtypeStruct((n_tiles, 1, tm), jnp.float32),
        grid_spec=pltpu.PrefetchScalarGridSpec(
            num_scalar_prefetch=0,
            grid=(n_tiles,),
            in_specs=[
                pl.BlockSpec((tm, D), lambda i: (i, 0)),       # activations stream per tile
                pl.BlockSpec((D, fc1), lambda i: (0, 0)),      # weights: constant index maps,
                pl.BlockSpec((1, fc1), lambda i: (0, 0)),      #   stay VMEM-resident across steps
                pl.BlockSpec((fc1, fc2), lambda i: (0, 0)),
                pl.BlockSpec((1, fc2), lambda i: (0, 0)),
                pl.BlockSpec((fc2, LANE), lambda i: (0, 0)),
                pl.BlockSpec((1, LANE), lambda i: (0, 0)),
            ],
            out_specs=pl.BlockSpec((1, 1, tm), lambda i: (i, 0, 0)),
        ),
        compiler_params=pltpu.CompilerParams(
            dimension_semantics=("parallel",),
        ),
        cost_estimate=cost,
    )(x, w1, b1, w2, b2, w3, b3)

    # Only the first B lane-values are real; the don't-care tail of the last tile is dropped
    # here (slice over a tiny (n_tiles*tm,) f32 vector, not the inflated (B,128) array).
    return out.reshape(-1)[:B].reshape(B, 1)


def init_params(key, input_d, fc1=256, fc2=256):
    """Deterministic init mimicking PyTorch nn.Linear default: U(-1/sqrt(fan_in), 1/sqrt(fan_in))."""
    ks = jax.random.split(key, 6)

    def linear(kw, kb, fan_in, fan_out):
        bound = 1.0 / jnp.sqrt(jnp.float32(fan_in))
        # stored already transposed: (fan_in, fan_out) so the kernel does x @ W
        w = jax.random.uniform(kw, (fan_in, fan_out), jnp.float32, -bound, bound)
        b = jax.random.uniform(kb, (1, fan_out), jnp.float32, -bound, bound)
        return w, b

    w1, b1 = linear(ks[0], ks[1], input_d, fc1)
    w2, b2 = linear(ks[2], ks[3], fc1, fc2)
    w3, b3 = linear(ks[4], ks[5], fc2, 1)
    return {"w1": w1, "b1": b1, "w2": w2, "b2": b2, "w3": w3, "b3": b3}


def reference_forward(state, p):
    h1 = jnp.maximum(state @ p["w1"] + p["b1"], 0.0)
    h2 = jnp.maximum(h1 @ p["w2"] + p["b2"], 0.0)
    return h2 @ p["w3"] + p["b3"]


if __name__ == "__main__":
    key = jax.random.PRNGKey(0)
    k_param, k_state = jax.random.split(key)

    B, INPUT_D = 8, 16          # small batch of flat observation vectors
    FC1, FC2 = 256, 256         # module defaults

    params = init_params(k_param, INPUT_D, FC1, FC2)
    state = jax.random.normal(k_state, (B, INPUT_D), jnp.float32)
    ref = reference_forward(state, params)

    # f32 compute path: tight check against the reference.
    v_f32 = jax.block_until_ready(ppo_critic_forward(state, params, compute_dtype=jnp.float32))
    assert v_f32.shape == (B, 1)
    assert jnp.allclose(v_f32, ref, atol=1e-4, rtol=1e-4), "mismatch vs reference (f32)"

    # Default bf16 MXU path (f32 accumulation): looser numeric tolerance.
    v_bf16 = jax.block_until_ready(ppo_critic_forward(state, params))
    assert v_bf16.shape == (B, 1)
    assert jnp.allclose(v_bf16, ref, atol=5e-2, rtol=5e-2), "mismatch vs reference (bf16)"

    # Multi-tile path: 2 grid tiles with a partial last input block (no wrapper padding).
    B2 = 1000
    state2 = jax.random.normal(jax.random.PRNGKey(3), (B2, INPUT_D), jnp.float32)
    ref2 = reference_forward(state2, params)

    v2_f32 = jax.block_until_ready(ppo_critic_forward(state2, params, compute_dtype=jnp.float32))
    assert v2_f32.shape == (B2, 1)
    assert jnp.allclose(v2_f32, ref2, atol=1e-4, rtol=1e-4), "mismatch vs reference (f32, batched)"

    v2_bf16 = jax.block_until_ready(ppo_critic_forward(state2, params))
    assert v2_bf16.shape == (B2, 1)
    assert jnp.allclose(v2_bf16, ref2, atol=5e-2, rtol=5e-2), "mismatch vs reference (bf16, batched)"

    print("KERNEL_OK")
</pallas_src>

<mosaic_0001>
module attributes {stable_mosaic.version = 11 : i64} {
  func.func @critic_kernel(%arg0: i32, %arg1: memref<128x16xf32, #tpu.memory_space<vmem>>, %arg2: memref<16x256xf32, #tpu.memory_space<vmem>>, %arg3: memref<1x256xf32, #tpu.memory_space<vmem>>, %arg4: memref<256x256xf32, #tpu.memory_space<vmem>>, %arg5: memref<1x256xf32, #tpu.memory_space<vmem>>, %arg6: memref<256x128xf32, #tpu.memory_space<vmem>>, %arg7: memref<1x128xf32, #tpu.memory_space<vmem>>, %arg8: memref<1x1x128xf32, #tpu.memory_space<vmem>>) attributes {dimension_semantics = [#tpu.dimension_semantics<parallel>], iteration_bounds = array<i64: 1>, scalar_prefetch = 0 : i64, scratch_operands = 0 : i64, tpu.core_type = #tpu.core_type<tc>, window_params = [{transform_indices = @transform_0, window_bounds = array<i64: 128, 16>}, {pipeline_mode = #tpu.pipeline_mode<synchronous>, transform_indices = @transform_1, window_bounds = array<i64: 16, 256>}, {pipeline_mode = #tpu.pipeline_mode<synchronous>, transform_indices = @transform_2, window_bounds = array<i64: 1, 256>}, {pipeline_mode = #tpu.pipeline_mode<synchronous>, transform_indices = @transform_3, window_bounds = array<i64: 256, 256>}, {pipeline_mode = #tpu.pipeline_mode<synchronous>, transform_indices = @transform_4, window_bounds = array<i64: 1, 256>}, {pipeline_mode = #tpu.pipeline_mode<synchronous>, transform_indices = @transform_5, window_bounds = array<i64: 256, 128>}, {pipeline_mode = #tpu.pipeline_mode<synchronous>, transform_indices = @transform_6, window_bounds = array<i64: 1, 128>}, {transform_indices = @transform_7, window_bounds = array<i64: 1, 1, 128>}]} {
    %c0 = arith.constant 0 : index
    %c0_0 = arith.constant 0 : index
    %0 = vector.load %arg1[%c0, %c0_0] : memref<128x16xf32, #tpu.memory_space<vmem>>, vector<128x16xf32>
    %c0_1 = arith.constant 0 : index
    %c0_2 = arith.constant 0 : index
    %1 = vector.load %arg2[%c0_1, %c0_2] : memref<16x256xf32, #tpu.memory_space<vmem>>, vector<16x256xf32>
    %cst = arith.constant dense<0.000000e+00> : vector<128x256xf32>
    %2 = tpu.matmul %0, %1, %cst {dimension_numbers = #tpu.dot_dimension_numbers<[1], [0], [0], [1], [0, 0, 1, 1], [], []>} : vector<128x16xf32>, vector<16x256xf32>, vector<128x256xf32> -> vector<128x256xf32>
    %c0_3 = arith.constant 0 : index
    %c0_4 = arith.constant 0 : index
    %3 = vector.load %arg3[%c0_3, %c0_4] : memref<1x256xf32, #tpu.memory_space<vmem>>, vector<1x256xf32>
    %4 = vector.broadcast %3 : vector<1x256xf32> to vector<128x256xf32>
    %5 = arith.addf %2, %4 : vector<128x256xf32>
    %cst_5 = arith.constant 0.000000e+00 : f32
    %6 = vector.broadcast %cst_5 : f32 to vector<128x256xf32>
    %7 = arith.maximumf %5, %6 : vector<128x256xf32>
    %c0_6 = arith.constant 0 : index
    %c0_7 = arith.constant 0 : index
    %8 = vector.load %arg4[%c0_6, %c0_7] : memref<256x256xf32, #tpu.memory_space<vmem>>, vector<256x256xf32>
    %cst_8 = arith.constant dense<0.000000e+00> : vector<128x256xf32>
    %9 = tpu.matmul %7, %8, %cst_8 {dimension_numbers = #tpu.dot_dimension_numbers<[1], [0], [0], [1], [0, 0, 1, 1], [], []>} : vector<128x256xf32>, vector<256x256xf32>, vector<128x256xf32> -> vector<128x256xf32>
    %c0_9 = arith.constant 0 : index
    %c0_10 = arith.constant 0 : index
    %10 = vector.load %arg5[%c0_9, %c0_10] : memref<1x256xf32, #tpu.memory_space<vmem>>, vector<1x256xf32>
    %11 = vector.broadcast %10 : vector<1x256xf32> to vector<128x256xf32>
    %12 = arith.addf %9, %11 : vector<128x256xf32>
    %cst_11 = arith.constant 0.000000e+00 : f32
    %13 = vector.broadcast %cst_11 : f32 to vector<128x256xf32>
    %14 = arith.maximumf %12, %13 : vector<128x256xf32>
    %c0_12 = arith.constant 0 : index
    %c0_13 = arith.constant 0 : index
    %15 = vector.load %arg6[%c0_12, %c0_13] : memref<256x128xf32, #tpu.memory_space<vmem>>, vector<256x128xf32>
    %cst_14 = arith.constant dense<0.000000e+00> : vector<128x128xf32>
    %16 = tpu.matmul %14, %15, %cst_14 {dimension_numbers = #tpu.dot_dimension_numbers<[1], [0], [0], [1], [0, 0, 1, 1], [], []>} : vector<128x256xf32>, vector<256x128xf32>, vector<128x128xf32> -> vector<128x128xf32>
    %c0_15 = arith.constant 0 : index
    %c0_16 = arith.constant 0 : index
    %17 = vector.load %arg7[%c0_15, %c0_16] : memref<1x128xf32, #tpu.memory_space<vmem>>, vector<1x128xf32>
    %18 = vector.broadcast %17 : vector<1x128xf32> to vector<128x128xf32>
    %19 = arith.addf %16, %18 : vector<128x128xf32>
    %20 = tpu.transpose %19, [1, 0] : vector<128x128xf32> -> vector<128x128xf32>
    %21 = vector.extract_strided_slice %20 {offsets = [0, 0], sizes = [1, 128], strides = [1, 1]} : vector<128x128xf32> to vector<1x128xf32>
    %22 = vector.shape_cast %21 : vector<1x128xf32> to vector<1x1x128xf32>
    %c0_17 = arith.constant 0 : index
    %c0_18 = arith.constant 0 : index
    %c0_19 = arith.constant 0 : index
    %23 = vector.load %arg8[%c0_17, %c0_18, %c0_19] : memref<1x1x128xf32, #tpu.memory_space<vmem>>, vector<1x1x128xf32>
    tpu.vector_store %arg8[%c0_17, %c0_18, %c0_19], %22 {strides = array<i32>} : memref<1x1x128xf32, #tpu.memory_space<vmem>>, vector<1x1x128xf32>,
    return
  }
  func.func @transform_0(%arg0: i32) -> (i32, i32) {
    %c0_i32 = arith.constant 0 : i32
    %c0_i32_0 = arith.constant 0 : i32
    return %arg0, %c0_i32 : i32, i32
  }
  func.func @transform_1(%arg0: i32) -> (i32, i32) {
    %c0_i32 = arith.constant 0 : i32
    %c0_i32_0 = arith.constant 0 : i32
    %c0_i32_1 = arith.constant 0 : i32
    return %c0_i32, %c0_i32_0 : i32, i32
  }
  func.func @transform_2(%arg0: i32) -> (i32, i32) {
    %c0_i32 = arith.constant 0 : i32
    %c0_i32_0 = arith.constant 0 : i32
    %c0_i32_1 = arith.constant 0 : i32
    return %c0_i32, %c0_i32_0 : i32, i32
  }
  func.func @transform_3(%arg0: i32) -> (i32, i32) {
    %c0_i32 = arith.constant 0 : i32
    %c0_i32_0 = arith.constant 0 : i32
    %c0_i32_1 = arith.constant 0 : i32
    return %c0_i32, %c0_i32_0 : i32, i32
  }
  func.func @transform_4(%arg0: i32) -> (i32, i32) {
    %c0_i32 = arith.constant 0 : i32
    %c0_i32_0 = arith.constant 0 : i32
    %c0_i32_1 = arith.constant 0 : i32
    return %c0_i32, %c0_i32_0 : i32, i32
  }
  func.func @transform_5(%arg0: i32) -> (i32, i32) {
    %c0_i32 = arith.constant 0 : i32
    %c0_i32_0 = arith.constant 0 : i32
    %c0_i32_1 = arith.constant 0 : i32
    return %c0_i32, %c0_i32_0 : i32, i32
  }
  func.func @transform_6(%arg0: i32) -> (i32, i32) {
    %c0_i32 = arith.constant 0 : i32
    %c0_i32_0 = arith.constant 0 : i32
    %c0_i32_1 = arith.constant 0 : i32
    return %c0_i32, %c0_i32_0 : i32, i32
  }
  func.func @transform_7(%arg0: i32) -> (i32, i32, i32) {
    %c0_i32 = arith.constant 0 : i32
    %c0_i32_0 = arith.constant 0 : i32
    %c0_i32_1 = arith.constant 0 : i32
    return %arg0, %c0_i32, %c0_i32_0 : i32, i32, i32
  }
}

</mosaic_0001>

<bundles_post_ra>
// kernel: tpu_custom_call.1
= control target key start
LH: loop header
LB: loop body
LE: loop exit
PB: predicated region body
PF: predicated region fallthrough
CT: control target
= control target key end

     0   :  { %12 = vsyncpa [#allocation3], 0  ;;  %s1456_s0 = inlined_call_operand.hbm [shape: f32[8,16], index: 0, kind: input, shape index: {}]   ;;  %s1457_s1 = inlined_call_operand.hbm [shape: f32[16,256], index: 1, kind: input, shape index: {}]   ;;  %s1458_s2 = inlined_call_operand.vmem [shape: f32[1,256], index: 2, kind: input, shape index: {}]   ;;  %s1459_s3 = inlined_call_operand.hbm [shape: f32[256,256], index: 3, kind: input, shape index: {}]   ;;  %s1460_s4 = inlined_call_operand.vmem [shape: f32[1,256], index: 4, kind: input, shape index: {}]   ;;  %s1461_s5 = inlined_call_operand.hbm [shape: f32[256,128], index: 5, kind: input, shape index: {}]   ;;  %s1462_s6 = inlined_call_operand.vmem [shape: f32[1,128], index: 6, kind: input, shape index: {}]   ;;  %s1463_s7 = inlined_call_operand.hbm [shape: f32[1,1,128], index: 7, kind: output, shape index: {}]  }
   0x1   :  { %13 = vsyncpa [#allocation6], 0 }
   0x2   :  { %14 = vsyncpa [#allocation9], 0 }
   0x3   :  { %15 = vsyncpa [#allocation4], 0 }
   0x4   :  { %20 = vsyncadd [#allocation3], 1920  ;;  %s1184_s24 = smov [#allocation5]   ;;  %s1066_s28 = scalar_lea.hbm %s1457_s1, 512 }
   0x5   :  { %s33_s25 = sshll.u32 %s1184_s24, 4  ;;  %p1067_p0 = scmp.ne.s32.totalorder %s1457_s1, %s1066_s28  ;;  %s34_s25 = int_to_ptr.vmem [resolvable:$true] %s33_s25 }
   0x6   :  { %p1070_p1 = scmp.lt.u32.totalorder %s1066_s28, %s1457_s1 }
   0x8   :  { %p1072_p2 = pnand %p1070_p1, %p1067_p0 }
   0xa   :  { %1075 = shalt.err (!%p1072_p2)
}
   0xb   :  { %s1076_s10 = scalar_lea.vmem %s34_s25, 512  ;;  %p1081_p4 = scmp.lt.s32.totalorder %s34_s25, %s34_s25 }
   0xc   :  { %p1077_p3 = scmp.ne.s32.totalorder %s34_s25, %s1076_s10  ;;  %p1082_p5 = scmp.lt.s32.totalorder %s1076_s10, %s1076_s10 }
   0xe   :  { %p1083_p6 = por %p1082_p5, %p1081_p4 }
  0x10   :  { %p1084_p7 = pnand %p1083_p6, %p1077_p3 }
  0x12   :  { %1087 = shalt.err (!%p1084_p7)
}
  0x13   :  { %s1185_s11 = smov 256   ;;  %s1186_s12 = smov 16  }
  0x14   :  { %39 = dma.hbm_to_vmem [thread:$0]  %s1457_s1, 512, %s34_s25, [#allocation6], %s1185_s11, %s1185_s11, %s1186_s12  }
  0x15   :  { %s1187_s15 = smov [#allocation2]   ;;  %s1088_s19 = scalar_lea.hbm %s1456_s0, 128 }
  0x16   :  { %s21_s16 = sshll.u32 %s1187_s15, 4  ;;  %p1089_p8 = scmp.ne.s32.totalorder %s1456_s0, %s1088_s19  ;;  %s22_s16 = int_to_ptr.vmem [resolvable:$true] %s21_s16 }
  0x17   :  { %p1092_p9 = scmp.lt.u32.totalorder %s1088_s19, %s1456_s0 }
  0x19   :  { %p1094_p10 = pnand %p1092_p9, %p1089_p8 }
  0x1b   :  { %1097 = shalt.err (!%p1094_p10)
}
  0x1c   :  { %s1098_s24 = scalar_lea.vmem %s22_s16, 128  ;;  %s1102_s1 = scalar_lea.vmem %s22_s16, 2048 }
  0x1d   :  { %p1099_p11 = scmp.ne.s32.totalorder %s22_s16, %s1098_s24  ;;  %p1103_p12 = scmp.lt.s32.totalorder %s22_s16, %s22_s16 }
  0x1e   :  { %p1104_p13 = scmp.lt.s32.totalorder %s1102_s1, %s1098_s24 }
  0x20   :  { %p1105_p0 = por %p1104_p13, %p1103_p12 }
  0x22   :  { %p1106_p1 = pnand %p1105_p0, %p1099_p11 }
  0x24   :  { %1109 = shalt.err (!%p1106_p1)
}
  0x25   :  { %s1188_s25 = smov 128   ;;  %s1189_s26 = smov 8  }
  0x26   :  { %27 = dma.hbm_to_vmem [thread:$0]  %s1456_s0, 128, %s22_s16, [#allocation3], %s1188_s25, %s1188_s25, %s1189_s26  }
  0x27   :  { %s1190_s29 = smov [#allocation7]   ;;  %s1191_s8 = smov [#allocation8]  }
  0x28   :  { %s47_s30 = sshll.u32 %s1190_s29, 4  ;;  %s61_s9 = sshll.u32 %s1191_s8, 4  ;;  %s48_s30 = int_to_ptr.vmem [resolvable:$true] %s47_s30  ;;  %s1264_s9 = int_to_ptr.vmem [resolvable:$true] %s61_s9 }
  0x29   :  { %s1110_s14 = scalar_lea.hbm %s1459_s3, 8192 }
  0x2a   :  { %p1111_p2 = scmp.ne.s32.totalorder %s1459_s3, %s1110_s14  ;;  %p1114_p3 = scmp.lt.u32.totalorder %s1110_s14, %s1459_s3 }
  0x2c   :  { %p1116_p4 = pnand %p1114_p3, %p1111_p2 }
  0x2e   :  { %1119 = shalt.err (!%p1116_p4)
}
  0x2f   :  { %s1120_s0 = scalar_lea.vmem %s48_s30, 8192  ;;  %p1125_p6 = scmp.lt.s32.totalorder %s48_s30, %s48_s30 }
  0x30   :  { %p1121_p5 = scmp.ne.s32.totalorder %s48_s30, %s1120_s0  ;;  %p1126_p7 = scmp.lt.s32.totalorder %s1120_s0, %s1120_s0 }
  0x32   :  { %p1127_p8 = por %p1126_p7, %p1125_p6 }
  0x34   :  { %p1128_p9 = pnand %p1127_p8, %p1121_p5 }
  0x36   :  { %1131 = shalt.err (!%p1128_p9)
}
  0x37   :  { %53 = dma.hbm_to_vmem [thread:$0]  %s1459_s3, 8192, %s48_s30, [#allocation6], %s1185_s11, %s1185_s11, %s1186_s12  }
  0x38   :  { %s1132_s23 = scalar_lea.hbm %s1461_s5, 4096 }
  0x39   :  { %p1133_p10 = scmp.ne.s32.totalorder %s1461_s5, %s1132_s23  ;;  %p1136_p11 = scmp.lt.u32.totalorder %s1132_s23, %s1461_s5 }
  0x3b   :  { %p1138_p12 = pnand %p1136_p11, %p1133_p10 }
  0x3d   :  { %1141 = shalt.err (!%p1138_p12)
}
  0x3e   :  { %s1142_s29 = scalar_lea.vmem %s1264_s9, 4096  ;;  %p1147_p0 = scmp.lt.s32.totalorder %s1264_s9, %s1264_s9 }
  0x3f   :  { %p1143_p13 = scmp.ne.s32.totalorder %s1264_s9, %s1142_s29  ;;  %p1148_p1 = scmp.lt.s32.totalorder %s1142_s29, %s1142_s29 }
  0x41   :  { %p1149_p2 = por %p1148_p1, %p1147_p0 }
  0x43   :  { %p1150_p3 = pnand %p1149_p2, %p1143_p13 }
  0x45   :  { %1153 = shalt.err (!%p1150_p3)
}
  0x46   :  { %67 = dma.hbm_to_vmem [thread:$0]  %s1461_s5, 4096, %s1264_s9, [#allocation9], %s1188_s25, %s1188_s25, %s1189_s26  }
  0x47   :  { %1176 = dma.done.wait [#allocation3], 2048  }
  0x48   :  { %1177 = vsyncadd [#allocation3], 4294965248 }
  0x49   :  { %1178 = dma.done.wait [#allocation6], 8704  }
  0x4a   :  { %1179 = vsyncadd [#allocation6], 4294958592 }
  0x4b   :  { %1180 = dma.done.wait [#allocation9], 4096  }
  0x4c   :  { %1181 = vsyncadd [#allocation9], 4294963200  ;;  %v1192_v0 = vmov 0.0   ;;  %v99_v1 = vld [vmem:[#allocation5 + $0x8] sm:$0xff]  ;;  %v101_v2 = vld [vmem:[#allocation5 + $0x18] sm:$0xff]  ;;  %vm114_vm0 = vcmask 130048  }
  0x4d   :  { %227 = vmatprep.mubr.f32.mxu0 %v1192_v0  ;;  %v98_v3 = vld [vmem:[#allocation5] sm:$0xff]  ;;  %v956_v4 = vpack.c.bf16 %v101_v2, %v99_v1  ;;  %v100_v5 = vld [vmem:[#allocation5 + $0x10] sm:$0xff]  ;;  %v83_v8 = vld [vmem:[#allocation2 + $0x8] sm:$0xff] }
  0x4e   :  { %v958_v6 = vpack.c.bf16 %v100_v5, %v98_v3  ;;  %v82_v7 = vld [vmem:[#allocation2] sm:$0xff]  ;;  %v357_v9 = vld [vmem:[#allocation7 + $0x8] sm:$0xff]  ;;  %v359_v10 = vld [vmem:[#allocation7 + $0x18] sm:$0xff] }
  0x4f   :  { %957 = vmatprep.subr.bf16.mxu0 %v956_v4  ;;  %v356_v11 = vld [vmem:[#allocation7] sm:$0xff]  ;;  %v358_v12 = vld [vmem:[#allocation7 + $0x10] sm:$0xff]  ;;  %v960_v13 = vpack.c.bf16 %v359_v10, %v357_v9  ;;  %v361_v15 = vld [vmem:[#allocation7 + $0x28] sm:$0xff] }
  0x50   :  { %959 = vmatpush1.bf16.msra.mxu0 %v958_v6  ;;  %v962_v14 = vpack.c.bf16 %v358_v12, %v356_v11  ;;  %v363_v16 = vld [vmem:[#allocation7 + $0x38] sm:$0xff]  ;;  %v360_v17 = vld [vmem:[#allocation7 + $0x20] sm:$0xff]  ;;  %v362_v19 = vld [vmem:[#allocation7 + $0x30] sm:$0xff] }
  0x51   :  { %v964_v18 = vpack.c.bf16 %v363_v16, %v361_v15  ;;  %v365_v20 = vld [vmem:[#allocation7 + $0x48] sm:$0xff]  ;;  %v367_v21 = vld [vmem:[#allocation7 + $0x58] sm:$0xff]  ;;  %961 = vmatprep.subr.bf16.mxu1 %v960_v13  ;;  %v966_v22 = vpack.c.bf16 %v362_v19, %v360_v17  ;;  %v84_v23 = vld [vmem:[#allocation2 + $0x10] sm:$0xff] }
  0x52   :  { %963 = vmatpush1.bf16.msra.mxu1 %v962_v14  ;;  %v968_v24 = vpack.c.bf16 %v367_v21, %v365_v20  ;;  %v364_v25 = vld [vmem:[#allocation7 + $0x40] sm:$0xff]  ;;  %v366_v26 = vld [vmem:[#allocation7 + $0x50] sm:$0xff]  ;;  %v369_v27 = vld [vmem:[#allocation7 + $0x68] sm:$0xff] }
  0x53   :  { %859 = vmatmul.mubr.msk.f32.vlgmr.msra.gmra.mrb[0].mxu0 %vm114_vm0, %v82_v7  ;;  %965 = vmatprep.subr.bf16.mxu1 %v964_v18  ;;  %v371_v28 = vld [vmem:[#allocation7 + $0x78] sm:$0xff]  ;;  %v970_v29 = vpack.c.bf16 %v366_v26, %v364_v25  ;;  %v368_v32 = vld [vmem:[#allocation7 + $0x60] sm:$0xff]  ;;  %v370_v33 = vld [vmem:[#allocation7 + $0x70] sm:$0xff] }
  0x54   :  { %233 = vmatprep.mubr.f32.mxu0 %v1192_v0  ;;  %v85_v30 = vld [vmem:[#allocation2 + $0x18] sm:$0xff]  ;;  %v972_v31 = vpack.c.bf16 %v371_v28, %v369_v27  ;;  %v373_v34 = vld [vmem:[#allocation7 + $0x88] sm:$0xff]  ;;  %v974_v36 = vpack.c.bf16 %v370_v33, %v368_v32  ;;  %v86_v37 = vld [vmem:[#allocation2 + $0x20] sm:$0xff] }
  0x55   :  { %v375_v35 = vld [vmem:[#allocation7 + $0x98] sm:$0xff]  ;;  %v372_v39 = vld [vmem:[#allocation7 + $0x80] sm:$0xff]  ;;  %v374_v40 = vld [vmem:[#allocation7 + $0x90] sm:$0xff] }
  0x56   :  { %967 = vmatpush1.bf16.msra.mxu1 %v966_v22  ;;  %v976_v38 = vpack.c.bf16 %v375_v35, %v373_v34  ;;  %v377_v41 = vld [vmem:[#allocation7 + $0xa8] sm:$0xff]  ;;  %v379_v42 = vld [vmem:[#allocation7 + $0xb8] sm:$0xff]  ;;  %v978_v43 = vpack.c.bf16 %v374_v40, %v372_v39  ;;  %v376_v46 = vld [vmem:[#allocation7 + $0xa0] sm:$0xff] }
  0x57   :  { %860 = vmatmul.mubr.msk.f32.gmra.mrb[2].mxu0 %vm114_vm0, %v83_v8  ;;  %969 = vmatprep.subr.bf16.mxu1 %v968_v24  ;;  %v87_v44 = vld [vmem:[#allocation2 + $0x28] sm:$0xff]  ;;  %v980_v45 = vpack.c.bf16 %v379_v42, %v377_v41  ;;  %v378_v47 = vld [vmem:[#allocation7 + $0xb0] sm:$0xff]  ;;  %v383_v49 = vld [vmem:[#allocation7 + $0xd8] sm:$0xff] }
  0x58   :  { %239 = vmatprep.mubr.f32.mxu0 %v1192_v0  ;;  %v381_v48 = vld [vmem:[#allocation7 + $0xc8] sm:$0xff]  ;;  %v982_v50 = vpack.c.bf16 %v378_v47, %v376_v46  ;;  %v88_v51 = vld [vmem:[#allocation2 + $0x30] sm:$0xff]  ;;  %v380_v53 = vld [vmem:[#allocation7 + $0xc0] sm:$0xff] }
  0x59   :  { %v984_v52 = vpack.c.bf16 %v383_v49, %v381_v48  ;;  %v382_v54 = vld [vmem:[#allocation7 + $0xd0] sm:$0xff]  ;;  %v385_v55 = vld [vmem:[#allocation7 + $0xe8] sm:$0xff]  ;;  %v387_v56 = vld [vmem:[#allocation7 + $0xf8] sm:$0xff] }
  0x5a   :  { %971 = vmatpush1.bf16.msra.mxu1 %v970_v29  ;;  %v986_v57 = vpack.c.bf16 %v382_v54, %v380_v53  ;;  %v89_v58 = vld [vmem:[#allocation2 + $0x38] sm:$0xff]  ;;  %v988_v59 = vpack.c.bf16 %v387_v56, %v385_v55  ;;  %v384_v60 = vld [vmem:[#allocation7 + $0xe0] sm:$0xff]  ;;  %v386_v61 = vld [vmem:[#allocation7 + $0xf0] sm:$0xff] }
  0x5b   :  { %861 = vmatmul.mubr.msk.f32.gmra.mrb[4].mxu0 %vm114_vm0, %v84_v23  ;;  %973 = vmatprep.subr.bf16.mxu1 %v972_v31  ;;  %v389_v62 = vld [vmem:[#allocation7 + $0x108] sm:$0xff]  ;;  %v391_v63 = vld [vmem:[#allocation7 + $0x118] sm:$0xff]  ;;  %v990_v1 = vpack.c.bf16 %v386_v61, %v384_v60  ;;  %v90_v2 = vld [vmem:[#allocation2 + $0x40] sm:$0xff] }
  0x5c   :  { %245 = vmatprep.mubr.f32.mxu0 %v1192_v0  ;;  %v992_v3 = vpack.c.bf16 %v391_v63, %v389_v62  ;;  %v388_v4 = vld [vmem:[#allocation7 + $0x100] sm:$0xff]  ;;  %v390_v5 = vld [vmem:[#allocation7 + $0x110] sm:$0xff]  ;;  %v393_v6 = vld [vmem:[#allocation7 + $0x128] sm:$0xff] }
  0x5d   :  { %v395_v7 = vld [vmem:[#allocation7 + $0x138] sm:$0xff]  ;;  %v994_v8 = vpack.c.bf16 %v390_v5, %v388_v4  ;;  %v91_v9 = vld [vmem:[#allocation2 + $0x48] sm:$0xff]  ;;  %v392_v11 = vld [vmem:[#allocation7 + $0x120] sm:$0xff] }
  0x5e   :  { %975 = vmatpush1.bf16.msra.mxu1 %v974_v36  ;;  %v996_v10 = vpack.c.bf16 %v395_v7, %v393_v6  ;;  %v394_v12 = vld [vmem:[#allocation7 + $0x130] sm:$0xff]  ;;  %v397_v13 = vld [vmem:[#allocation7 + $0x148] sm:$0xff]  ;;  %v399_v14 = vld [vmem:[#allocation7 + $0x158] sm:$0xff] }
  0x5f   :  { %862 = vmatmul.mubr.msk.f32.gmra.mrb[6].mxu0 %vm114_vm0, %v85_v30  ;;  %977 = vmatprep.subr.bf16.mxu1 %v976_v38  ;;  %v998_v15 = vpack.c.bf16 %v394_v12, %v392_v11  ;;  %v92_v16 = vld [vmem:[#allocation2 + $0x50] sm:$0xff]  ;;  %v1000_v17 = vpack.c.bf16 %v399_v14, %v397_v13  ;;  %v396_v18 = vld [vmem:[#allocation7 + $0x140] sm:$0xff]  ;;  %v401_v20 = vld [vmem:[#allocation7 + $0x168] sm:$0xff] }
  0x60   :  { %251 = vmatprep.mubr.f32.mxu0 %v1192_v0  ;;  %v398_v19 = vld [vmem:[#allocation7 + $0x150] sm:$0xff]  ;;  %v403_v21 = vld [vmem:[#allocation7 + $0x178] sm:$0xff]  ;;  %v400_v25 = vld [vmem:[#allocation7 + $0x160] sm:$0xff] }
  0x61   :  { %v1002_v22 = vpack.c.bf16 %v398_v19, %v396_v18  ;;  %v93_v23 = vld [vmem:[#allocation2 + $0x58] sm:$0xff]  ;;  %v1004_v24 = vpack.c.bf16 %v403_v21, %v401_v20  ;;  %v402_v26 = vld [vmem:[#allocation7 + $0x170] sm:$0xff]  ;;  %v405_v27 = vld [vmem:[#allocation7 + $0x188] sm:$0xff] }
  0x62   :  { %979 = vmatpush1.bf16.msra.mxu1 %v978_v43  ;;  %v407_v28 = vld [vmem:[#allocation7 + $0x198] sm:$0xff]  ;;  %v1006_v29 = vpack.c.bf16 %v402_v26, %v400_v25  ;;  %v94_v30 = vld [vmem:[#allocation2 + $0x60] sm:$0xff]  ;;  %v406_v33 = vld [vmem:[#allocation7 + $0x190] sm:$0xff] }
  0x63   :  { %863 = vmatmul.mubr.msk.f32.gmra.mrb[8].mxu0 %vm114_vm0, %v86_v37  ;;  %981 = vmatprep.subr.bf16.mxu1 %v980_v45  ;;  %v1008_v31 = vpack.c.bf16 %v407_v28, %v405_v27  ;;  %v404_v32 = vld [vmem:[#allocation7 + $0x180] sm:$0xff]  ;;  %v409_v34 = vld [vmem:[#allocation7 + $0x1a8] sm:$0xff]  ;;  %v411_v35 = vld [vmem:[#allocation7 + $0x1b8] sm:$0xff] }
  0x64   :  { %257 = vmatprep.mubr.f32.mxu0 %v1192_v0  ;;  %v1010_v36 = vpack.c.bf16 %v406_v33, %v404_v32  ;;  %v95_v37 = vld [vmem:[#allocation2 + $0x68] sm:$0xff]  ;;  %v1012_v38 = vpack.c.bf16 %v411_v35, %v409_v34  ;;  %v408_v39 = vld [vmem:[#allocation7 + $0x1a0] sm:$0xff]  ;;  %v410_v40 = vld [vmem:[#allocation7 + $0x1b0] sm:$0xff] }
  0x65   :  { %v413_v41 = vld [vmem:[#allocation7 + $0x1c8] sm:$0xff]  ;;  %v415_v42 = vld [vmem:[#allocation7 + $0x1d8] sm:$0xff]  ;;  %v1014_v43 = vpack.c.bf16 %v410_v40, %v408_v39  ;;  %v412_v47 = vld [vmem:[#allocation7 + $0x1c0] sm:$0xff]  ;;  %v104_v40 = vlaneseq }
  0x66   :  { %983 = vmatpush1.bf16.msra.mxu1 %v982_v50  ;;  %v1016_v45 = vpack.c.bf16 %v415_v42, %v413_v41  ;;  %v97_v46 = vld [vmem:[#allocation2 + $0x78] sm:$0xff]  ;;  %v414_v48 = vld [vmem:[#allocation7 + $0x1d0] sm:$0xff]  ;;  %v417_v50 = vld [vmem:[#allocation7 + $0x1e8] sm:$0xff] }
  0x67   :  { %864 = vmatmul.mubr.msk.f32.gmra.mrb[10].mxu0 %vm114_vm0, %v87_v44  ;;  %985 = vmatprep.subr.bf16.mxu1 %v984_v52  ;;  %v96_v44 = vld [vmem:[#allocation2 + $0x70] sm:$0xff]  ;;  %v1018_v49 = vpack.c.bf16 %v414_v48, %v412_v47  ;;  %v416_v53 = vld [vmem:[#allocation7 + $0x1e0] sm:$0xff]  ;;  %v644_v61 = vld [vmem:[#allocation8 + $0x98] sm:$0xff]  ;;  %v1333_v41 = vshrl.u32 %v104_v40, 7 }
  0x68   :  { %263 = vmatprep.mubr.f32.mxu0 %v1192_v0  ;;  %v418_v54 = vld [vmem:[#allocation7 + $0x1f0] sm:$0xff]  ;;  %v641_v56 = vld [vmem:[#allocation8 + $0x80] sm:$0xff]  ;;  %v646_v4 = vld [vmem:[#allocation8 + $0xa8] sm:$0xff] }
  0x69   :  { %v1022_v55 = vpack.c.bf16 %v418_v54, %v416_v53  ;;  %v643_v60 = vld [vmem:[#allocation8 + $0x90] sm:$0xff]  ;;  %v629_v7 = vld [vmem:[#allocation8 + $0x20] sm:$0xff]  ;;  %v632_v14 = vld [vmem:[#allocation8 + $0x38] sm:$0xff]  ;;  %v106_v42 = vsub.s32 0, %v1333_v41 }
  0x6a   :  { %987 = vmatpush1.bf16.msra.mxu1 %v986_v57  ;;  %v642_v57 = vld [vmem:[#allocation8 + $0x88] sm:$0xff]  ;;  %v1028_v63 = vpack.c.bf16 %v644_v61, %v643_v60  ;;  %v631_v13 = vld [vmem:[#allocation8 + $0x30] sm:$0xff]  ;;  %v633_v19 = vld [vmem:[#allocation8 + $0x40] sm:$0xff] }
  0x6b   :  { %865 = vmatmul.mubr.msk.f32.gmra.mrb[12].mxu0 %vm114_vm0, %v88_v51  ;;  %989 = vmatprep.subr.bf16.mxu1 %v988_v59  ;;  %v419_v51 = vld [vmem:[#allocation7 + $0x1f8] sm:$0xff]  ;;  %v626_v59 = vld [vmem:[#allocation8 + $0x8] sm:$0xff]  ;;  %v651_v21 = vld [vmem:[#allocation8 + $0xd0] sm:$0xff] }
  0x6c   :  { %269 = vmatprep.mubr.f32.mxu0 %v1192_v0  ;;  %v1020_v52 = vpack.c.bf16 %v419_v51, %v417_v50  ;;  %v634_v20 = vld [vmem:[#allocation8 + $0x48] sm:$0xff]  ;;  %v635_v25 = vld [vmem:[#allocation8 + $0x50] sm:$0xff]  ;;  %v636_v26 = vld [vmem:[#allocation8 + $0x58] sm:$0xff] }
  0x6d   :  { %v653_v27 = vld [vmem:[#allocation8 + $0xe0] sm:$0xff]  ;;  %v654_v28 = vld [vmem:[#allocation8 + $0xe8] sm:$0xff]  ;;  %v655_v33 = vld [vmem:[#allocation8 + $0xf0] sm:$0xff] }
  0x6e   :  { %991 = vmatpush1.bf16.msra.mxu1 %v990_v1  ;;  %v627_v1 = vld [vmem:[#allocation8 + $0x10] sm:$0xff]  ;;  %v638_v32 = vld [vmem:[#allocation8 + $0x68] sm:$0xff]  ;;  %v656_v34 = vld [vmem:[#allocation8 + $0xf8] sm:$0xff] }
  0x6f   :  { %866 = vmatmul.mubr.msk.f32.gmra.mrb[14].mxu0 %vm114_vm0, %v89_v58  ;;  %993 = vmatprep.subr.bf16.mxu1 %v992_v3  ;;  %v625_v58 = vld [vmem:[#allocation8] sm:$0xff] }
  0x70   :  { %275 = vmatprep.mubr.f32.mxu0 %v1192_v0  ;;  %v1026_v62 = vpack.c.bf16 %v626_v59, %v625_v58  ;;  %v645_v3 = vld [vmem:[#allocation8 + $0xa0] sm:$0xff] }
  0x71   :  { %v1032_v6 = vpack.c.bf16 %v646_v4, %v645_v3 }
  0x72   :  { %995 = vmatpush1.bf16.msra.mxu1 %v994_v8  ;;  %v630_v8 = vld [vmem:[#allocation8 + $0x28] sm:$0xff] }
  0x73   :  { %867 = vmatmul.mubr.msk.f32.gmra.mrb[16].mxu0 %vm114_vm0, %v90_v2  ;;  %997 = vmatprep.subr.bf16.mxu1 %v996_v10  ;;  %v628_v2 = vld [vmem:[#allocation8 + $0x18] sm:$0xff]  ;;  %v1034_v11 = vpack.c.bf16 %v630_v8, %v629_v7 }
  0x74   :  { %281 = vmatprep.mubr.f32.mxu0 %v1192_v0  ;;  %v1030_v5 = vpack.c.bf16 %v628_v2, %v627_v1  ;;  %v648_v10 = vld [vmem:[#allocation8 + $0xb8] sm:$0xff] }
  0x76   :  { %999 = vmatpush1.bf16.msra.mxu1 %v998_v15  ;;  %v649_v15 = vld [vmem:[#allocation8 + $0xc0] sm:$0xff] }
  0x77   :  { %868 = vmatmul.mubr.msk.f32.gmra.mrb[18].mxu0 %vm114_vm0, %v91_v9  ;;  %1001 = vmatprep.subr.bf16.mxu1 %v1000_v17  ;;  %v647_v9 = vld [vmem:[#allocation8 + $0xb0] sm:$0xff]  ;;  %v1038_v17 = vpack.c.bf16 %v632_v14, %v631_v13 }
  0x78   :  { %287 = vmatprep.mubr.f32.mxu0 %v1192_v0  ;;  %v1036_v12 = vpack.c.bf16 %v648_v10, %v647_v9 }
  0x7a   :  { %1003 = vmatpush1.bf16.msra.mxu1 %v1002_v22  ;;  %v652_v22 = vld [vmem:[#allocation8 + $0xd8] sm:$0xff] }
  0x7b   :  { %869 = vmatmul.mubr.msk.f32.gmra.mrb[20].mxu0 %vm114_vm0, %v92_v16  ;;  %1005 = vmatprep.subr.bf16.mxu1 %v1004_v24  ;;  %v650_v16 = vld [vmem:[#allocation8 + $0xc8] sm:$0xff]  ;;  %v1044_v24 = vpack.c.bf16 %v652_v22, %v651_v21 }
  0x7c   :  { %293 = vmatprep.mubr.f32.mxu0 %v1192_v0  ;;  %v1040_v18 = vpack.c.bf16 %v650_v16, %v649_v15 }
  0x7e   :  { %1007 = vmatpush1.bf16.msra.mxu1 %v1006_v29  ;;  %v1046_v29 = vpack.c.bf16 %v636_v26, %v635_v25 }
  0x7f   :  { %870 = vmatmul.mubr.msk.f32.gmra.mrb[22].mxu0 %vm114_vm0, %v93_v23  ;;  %1009 = vmatprep.subr.bf16.mxu1 %v1008_v31  ;;  %v1042_v23 = vpack.c.bf16 %v634_v20, %v633_v19  ;;  %v637_v31 = vld [vmem:[#allocation8 + $0x60] sm:$0xff] }
  0x80   :  { %299 = vmatprep.mubr.f32.mxu0 %v1192_v0  ;;  %v1050_v35 = vpack.c.bf16 %v638_v32, %v637_v31 }
  0x82   :  { %1011 = vmatpush1.bf16.msra.mxu1 %v1010_v36  ;;  %v1052_v36 = vpack.c.bf16 %v656_v34, %v655_v33 }
  0x83   :  { %871 = vmatmul.mubr.msk.f32.gmra.mrb[24].mxu0 %vm114_vm0, %v94_v30  ;;  %1013 = vmatprep.subr.bf16.mxu1 %v1012_v38  ;;  %v1048_v30 = vpack.c.bf16 %v654_v28, %v653_v27  ;;  %v640_v38 = vld [vmem:[#allocation8 + $0x78] sm:$0xff] }
  0x84   :  { %305 = vmatprep.mubr.f32.mxu0 %v1192_v0 }
  0x86   :  { %1015 = vmatpush1.bf16.msra.mxu1 %v1014_v43  ;;  %v102_v43 = vld [vmem:[%s1458_s2] sm:$0x3] }
  0x87   :  { %872 = vmatmul.mubr.msk.f32.gmra.mrb[26].mxu0 %vm114_vm0, %v95_v37  ;;  %1017 = vmatprep.subr.bf16.mxu1 %v1016_v45  ;;  %v639_v37 = vld [vmem:[#allocation8 + $0x70] sm:$0xff]  ;;  %v1342_v45 = vrot.slane %v102_v43, %v106_v42 }
  0x88   :  { %311 = vmatprep.mubr.f32.mxu0 %v1192_v0  ;;  %v1054_v39 = vpack.c.bf16 %v640_v38, %v639_v37 }
  0x8a   :  { %1019 = vmatpush1.bf16.msra.mxu1 %v1018_v49 }
  0x8b   :  { %873 = vmatmul.mubr.msk.f32.gmra.mrb[28].mxu0 %vm114_vm0, %v96_v44  ;;  %1021 = vmatprep.subr.bf16.mxu1 %v1020_v52  ;;  %v110_v44 = vsub.s32 1, %v1333_v41 }
  0x8c   :  { %317 = vmatprep.mubr.f32.mxu0 %v1192_v0  ;;  %v1024_v0 = vpack.c.bf16 %v642_v57, %v641_v56 }
  0x8e   :  { %1023 = vmatpush1.bf16.msra.mxu1 %v1022_v55  ;;  %1025 = vmatprep.subr.bf16.mxu0 %v1024_v0 }
  0x8f   :  { %874 = vmatmul.mubr.msk.f32.gmra.mrb[30].mxu0 %vm114_vm0, %v97_v46  ;;  %v1346_v46 = vrot.slane %v102_v43, %v110_v44 }
  0x90   :  { %1027 = vmatpush3.bf16.msra.mxu0 %v1026_v62 }
  0x91   :  { %1029 = vmatprep.subr.bf16.mxu0 %v1028_v63 }
  0x94   :  { %1031 = vmatpush3.bf16.msra.mxu0 %v1030_v5 }
  0x95   :  { %1033 = vmatprep.subr.bf16.mxu0 %v1032_v6 }
  0x98   :  { %1035 = vmatpush3.bf16.msra.mxu0 %v1034_v11 }
  0x99   :  { %1037 = vmatprep.subr.bf16.mxu0 %v1036_v12 }
  0x9c   :  { %1039 = vmatpush3.bf16.msra.mxu0 %v1038_v17 }
  0x9d   :  { %1041 = vmatprep.subr.bf16.mxu0 %v1040_v18 }
  0xa0   :  { %1043 = vmatpush3.bf16.msra.mxu0 %v1042_v23 }
  0xa1   :  { %1045 = vmatprep.subr.bf16.mxu0 %v1044_v24 }
  0xa4   :  { %1047 = vmatpush3.bf16.msra.mxu0 %v1046_v29 }
  0xa5   :  { %1049 = vmatprep.subr.bf16.mxu0 %v1048_v30 }
  0xa8   :  { %1051 = vmatpush3.bf16.msra.mxu0 %v1050_v35 }
  0xa9   :  { %1053 = vmatprep.subr.bf16.mxu0 %v1052_v36 }
  0xac   :  { %1055 = vmatpush3.bf16.msra.mxu0 %v1054_v39 }
 0x126   :  { %v229_v47 = vpop.f32.mrb[0].mxu0 }
 0x127   :  { %v230_v48 = vadd.f32 %v229_v47, %v1342_v45  ;;  %v231_v49 = vpop.f32.mrb[1].mxu0 }
 0x128   :  { %v232_v50 = vadd.f32 %v231_v49, %v1346_v46 }
 0x129   :  { %v324_v53 = vmax.f32 %v230_v48, 0.0 }
 0x12a   :  { %v235_v51 = vpop.f32.mrb[2].mxu0  ;;  %v325_v52 = vmax.f32 %v232_v50, 0.0 }
 0x12b   :  { %v236_v54 = vadd.f32 %v235_v51, %v1342_v45  ;;  %v237_v55 = vpop.f32.mrb[3].mxu0 }
 0x12c   :  { %v238_v56 = vadd.f32 %v237_v55, %v1346_v46  ;;  %496 = vmatprep.mubr.f32.mxu1 %v325_v52 }
 0x12d   :  { %497 = vmatmul.mubr.f32.vlgmr.msra.gmra.mrb[0].mxu1 %v324_v53  ;;  %v326_v0 = vmax.f32 %v236_v54, 0.0 }
 0x12e   :  { %v327_v57 = vmax.f32 %v238_v56, 0.0  ;;  %v241_v58 = vpop.f32.mrb[4].mxu0 }
 0x12f   :  { %v242_v59 = vadd.f32 %v241_v58, %v1342_v45  ;;  %v243_v60 = vpop.f32.mrb[5].mxu0 }
 0x130   :  { %v244_v61 = vadd.f32 %v243_v60, %v1346_v46  ;;  %502 = vmatprep.mubr.f32.mxu1 %v327_v57 }
 0x131   :  { %503 = vmatmul.mubr.f32.gmra.mrb[2].mxu1 %v326_v0  ;;  %v328_v1 = vmax.f32 %v242_v59, 0.0 }
 0x132   :  { %v329_v62 = vmax.f32 %v244_v61, 0.0  ;;  %v247_v63 = vpop.f32.mrb[6].mxu0 }
 0x133   :  { %v248_v2 = vadd.f32 %v247_v63, %v1342_v45  ;;  %v249_v3 = vpop.f32.mrb[7].mxu0 }
 0x134   :  { %v250_v4 = vadd.f32 %v249_v3, %v1346_v46  ;;  %508 = vmatprep.mubr.f32.mxu1 %v329_v62 }
 0x135   :  { %509 = vmatmul.mubr.f32.gmra.mrb[4].mxu1 %v328_v1  ;;  %v330_v7 = vmax.f32 %v248_v2, 0.0 }
 0x136   :  { %v331_v5 = vmax.f32 %v250_v4, 0.0  ;;  %v253_v6 = vpop.f32.mrb[8].mxu0 }
 0x137   :  { %v254_v8 = vadd.f32 %v253_v6, %v1342_v45  ;;  %v255_v9 = vpop.f32.mrb[9].mxu0 }
 0x138   :  { %v256_v10 = vadd.f32 %v255_v9, %v1346_v46  ;;  %514 = vmatprep.mubr.f32.mxu1 %v331_v5 }
 0x139   :  { %515 = vmatmul.mubr.f32.gmra.mrb[6].mxu1 %v330_v7  ;;  %v332_v13 = vmax.f32 %v254_v8, 0.0 }
 0x13a   :  { %v333_v11 = vmax.f32 %v256_v10, 0.0  ;;  %v259_v12 = vpop.f32.mrb[10].mxu0 }
 0x13b   :  { %v260_v14 = vadd.f32 %v259_v12, %v1342_v45  ;;  %v261_v15 = vpop.f32.mrb[11].mxu0 }
 0x13c   :  { %v262_v16 = vadd.f32 %v261_v15, %v1346_v46  ;;  %520 = vmatprep.mubr.f32.mxu1 %v333_v11 }
 0x13d   :  { %521 = vmatmul.mubr.f32.gmra.mrb[8].mxu1 %v332_v13  ;;  %v334_v19 = vmax.f32 %v260_v14, 0.0 }
 0x13e   :  { %v335_v17 = vmax.f32 %v262_v16, 0.0  ;;  %v265_v18 = vpop.f32.mrb[12].mxu0 }
 0x13f   :  { %v266_v20 = vadd.f32 %v265_v18, %v1342_v45  ;;  %v267_v21 = vpop.f32.mrb[13].mxu0 }
 0x140   :  { %v268_v22 = vadd.f32 %v267_v21, %v1346_v46  ;;  %526 = vmatprep.mubr.f32.mxu1 %v335_v17 }
 0x141   :  { %527 = vmatmul.mubr.f32.gmra.mrb[10].mxu1 %v334_v19  ;;  %v336_v25 = vmax.f32 %v266_v20, 0.0  ;;  %v420_v20 = vld [vmem:[%s1460_s4] sm:$0x3] }
 0x142   :  { %v337_v23 = vmax.f32 %v268_v22, 0.0  ;;  %v271_v24 = vpop.f32.mrb[14].mxu0  ;;  %v1385_v21 = vrot.slane %v420_v20, %v106_v42 }
 0x143   :  { %v272_v26 = vadd.f32 %v271_v24, %v1342_v45  ;;  %v273_v27 = vpop.f32.mrb[15].mxu0 }
 0x144   :  { %v274_v28 = vadd.f32 %v273_v27, %v1346_v46  ;;  %532 = vmatprep.mubr.f32.mxu1 %v337_v23 }
 0x145   :  { %533 = vmatmul.mubr.f32.gmra.mrb[12].mxu1 %v336_v25  ;;  %v338_v31 = vmax.f32 %v272_v26, 0.0 }
 0x146   :  { %v339_v29 = vmax.f32 %v274_v28, 0.0  ;;  %v277_v30 = vpop.f32.mrb[16].mxu0 }
 0x147   :  { %v278_v32 = vadd.f32 %v277_v30, %v1342_v45  ;;  %v279_v33 = vpop.f32.mrb[17].mxu0 }
 0x148   :  { %v280_v34 = vadd.f32 %v279_v33, %v1346_v46  ;;  %538 = vmatprep.mubr.f32.mxu1 %v339_v29 }
 0x149   :  { %539 = vmatmul.mubr.f32.gmra.mrb[14].mxu1 %v338_v31  ;;  %v340_v37 = vmax.f32 %v278_v32, 0.0 }
 0x14a   :  { %v341_v35 = vmax.f32 %v280_v34, 0.0  ;;  %v283_v36 = vpop.f32.mrb[18].mxu0 }
 0x14b   :  { %v284_v38 = vadd.f32 %v283_v36, %v1342_v45  ;;  %v285_v39 = vpop.f32.mrb[19].mxu0 }
 0x14c   :  { %v286_v40 = vadd.f32 %v285_v39, %v1346_v46  ;;  %544 = vmatprep.mubr.f32.mxu1 %v341_v35 }
 0x14d   :  { %545 = vmatmul.mubr.f32.gmra.mrb[16].mxu1 %v340_v37  ;;  %v342_v48 = vmax.f32 %v284_v38, 0.0 }
 0x14e   :  { %v343_v43 = vmax.f32 %v286_v40, 0.0  ;;  %v289_v47 = vpop.f32.mrb[20].mxu0 }
 0x14f   :  { %v290_v49 = vadd.f32 %v289_v47, %v1342_v45  ;;  %v291_v50 = vpop.f32.mrb[21].mxu0 }
 0x150   :  { %v292_v51 = vadd.f32 %v291_v50, %v1346_v46  ;;  %550 = vmatprep.mubr.f32.mxu1 %v343_v43 }
 0x151   :  { %551 = vmatmul.mubr.f32.gmra.mrb[18].mxu1 %v342_v48  ;;  %v344_v54 = vmax.f32 %v290_v49, 0.0 }
 0x152   :  { %v345_v52 = vmax.f32 %v292_v51, 0.0  ;;  %v295_v53 = vpop.f32.mrb[22].mxu0 }
 0x153   :  { %v296_v55 = vadd.f32 %v295_v53, %v1342_v45  ;;  %v297_v56 = vpop.f32.mrb[23].mxu0 }
 0x154   :  { %v298_v57 = vadd.f32 %v297_v56, %v1346_v46  ;;  %556 = vmatprep.mubr.f32.mxu1 %v345_v52 }
 0x155   :  { %557 = vmatmul.mubr.f32.gmra.mrb[20].mxu1 %v344_v54  ;;  %v346_v59 = vmax.f32 %v296_v55, 0.0 }
 0x156   :  { %v347_v58 = vmax.f32 %v298_v57, 0.0  ;;  %v301_v0 = vpop.f32.mrb[24].mxu0 }
 0x157   :  { %v302_v60 = vadd.f32 %v301_v0, %v1342_v45  ;;  %v303_v61 = vpop.f32.mrb[25].mxu0 }
 0x158   :  { %v304_v62 = vadd.f32 %v303_v61, %v1346_v46  ;;  %562 = vmatprep.mubr.f32.mxu1 %v347_v58 }
 0x159   :  { %563 = vmatmul.mubr.f32.gmra.mrb[22].mxu1 %v346_v59  ;;  %v348_v2 = vmax.f32 %v302_v60, 0.0 }
 0x15a   :  { %v349_v63 = vmax.f32 %v304_v62, 0.0  ;;  %v307_v1 = vpop.f32.mrb[26].mxu0 }
 0x15b   :  { %v308_v3 = vadd.f32 %v307_v1, %v1342_v45  ;;  %v309_v4 = vpop.f32.mrb[27].mxu0 }
 0x15c   :  { %v310_v5 = vadd.f32 %v309_v4, %v1346_v46  ;;  %568 = vmatprep.mubr.f32.mxu1 %v349_v63 }
 0x15d   :  { %569 = vmatmul.mubr.f32.gmra.mrb[24].mxu1 %v348_v2  ;;  %v350_v8 = vmax.f32 %v308_v3, 0.0 }
 0x15e   :  { %v351_v6 = vmax.f32 %v310_v5, 0.0  ;;  %v313_v7 = vpop.f32.mrb[28].mxu0 }
 0x15f   :  { %v314_v9 = vadd.f32 %v313_v7, %v1342_v45  ;;  %v315_v10 = vpop.f32.mrb[29].mxu0 }
 0x160   :  { %v316_v11 = vadd.f32 %v315_v10, %v1346_v46  ;;  %574 = vmatprep.mubr.f32.mxu1 %v351_v6 }
 0x161   :  { %575 = vmatmul.mubr.f32.gmra.mrb[26].mxu1 %v350_v8  ;;  %v352_v14 = vmax.f32 %v314_v9, 0.0 }
 0x162   :  { %v353_v12 = vmax.f32 %v316_v11, 0.0  ;;  %v319_v13 = vpop.f32.mrb[30].mxu0 }
 0x163   :  { %v320_v15 = vadd.f32 %v319_v13, %v1342_v45  ;;  %v321_v16 = vpop.f32.mrb[31].mxu0  ;;  %v1389_v45 = vrot.slane %v420_v20, %v110_v44 }
 0x164   :  { %v322_v17 = vadd.f32 %v321_v16, %v1346_v46  ;;  %580 = vmatprep.mubr.f32.mxu1 %v353_v12 }
 0x165   :  { %581 = vmatmul.mubr.f32.gmra.mrb[28].mxu1 %v352_v14  ;;  %v354_v19 = vmax.f32 %v320_v15, 0.0 }
 0x166   :  { %v355_v18 = vmax.f32 %v322_v17, 0.0 }
 0x168   :  { %586 = vmatprep.mubr.f32.mxu1 %v355_v18 }
 0x169   :  { %587 = vmatmul.mubr.f32.gmra.mrb[30].mxu1 %v354_v19 }
 0x200   :  { %v498_v22 = vpop.f32.mrb[0].mxu1 }
 0x201   :  { %v499_v46 = vadd.f32 %v498_v22, %v1385_v21  ;;  %v500_v23 = vpop.f32.mrb[1].mxu1 }
 0x202   :  { %v501_v24 = vadd.f32 %v500_v23, %v1389_v45 }
 0x203   :  { %v593_v27 = vmax.f32 %v499_v46, 0.0 }
 0x204   :  { %v594_v25 = vmax.f32 %v501_v24, 0.0  ;;  %v504_v26 = vpop.f32.mrb[2].mxu1 }
 0x205   :  { %v505_v28 = vadd.f32 %v504_v26, %v1385_v21  ;;  %v506_v29 = vpop.f32.mrb[3].mxu1 }
 0x206   :  { %v507_v30 = vadd.f32 %v506_v29, %v1389_v45  ;;  %728 = vmatprep.mubr.f32.mxu0 %v594_v25 }
 0x207   :  { %729 = vmatmul.mubr.f32.vlgmr.msra.gmra.mrb[32].mxu0 %v593_v27  ;;  %v595_v44 = vmax.f32 %v505_v28, 0.0 }
 0x208   :  { %v596_v42 = vmax.f32 %v507_v30, 0.0  ;;  %v510_v41 = vpop.f32.mrb[4].mxu1 }
 0x209   :  { %v511_v31 = vadd.f32 %v510_v41, %v1385_v21  ;;  %v512_v32 = vpop.f32.mrb[5].mxu1 }
 0x20a   :  { %v513_v33 = vadd.f32 %v512_v32, %v1389_v45  ;;  %733 = vmatprep.mubr.f32.mxu0 %v596_v42 }
 0x20b   :  { %734 = vmatmul.mubr.f32.gmra.mrb[34].mxu0 %v595_v44  ;;  %v597_v36 = vmax.f32 %v511_v31, 0.0 }
 0x20c   :  { %v598_v34 = vmax.f32 %v513_v33, 0.0  ;;  %v516_v35 = vpop.f32.mrb[6].mxu1 }
 0x20d   :  { %v517_v37 = vadd.f32 %v516_v35, %v1385_v21  ;;  %v518_v38 = vpop.f32.mrb[7].mxu1 }
 0x20e   :  { %v519_v39 = vadd.f32 %v518_v38, %v1389_v45  ;;  %738 = vmatprep.mubr.f32.mxu0 %v598_v34 }
 0x20f   :  { %739 = vmatmul.mubr.f32.gmra.mrb[36].mxu0 %v597_v36  ;;  %v599_v47 = vmax.f32 %v517_v37, 0.0 }
 0x210   :  { %v600_v40 = vmax.f32 %v519_v39, 0.0  ;;  %v522_v43 = vpop.f32.mrb[8].mxu1 }
 0x211   :  { %v523_v48 = vadd.f32 %v522_v43, %v1385_v21  ;;  %v524_v49 = vpop.f32.mrb[9].mxu1 }
 0x212   :  { %v525_v50 = vadd.f32 %v524_v49, %v1389_v45  ;;  %743 = vmatprep.mubr.f32.mxu0 %v600_v40 }
 0x213   :  { %744 = vmatmul.mubr.f32.gmra.mrb[38].mxu0 %v599_v47  ;;  %v601_v53 = vmax.f32 %v523_v48, 0.0 }
 0x214   :  { %v602_v51 = vmax.f32 %v525_v50, 0.0  ;;  %v528_v52 = vpop.f32.mrb[10].mxu1 }
 0x215   :  { %v529_v54 = vadd.f32 %v528_v52, %v1385_v21  ;;  %v530_v55 = vpop.f32.mrb[11].mxu1 }
 0x216   :  { %v531_v56 = vadd.f32 %v530_v55, %v1389_v45  ;;  %748 = vmatprep.mubr.f32.mxu0 %v602_v51 }
 0x217   :  { %749 = vmatmul.mubr.f32.gmra.mrb[40].mxu0 %v601_v53  ;;  %v603_v0 = vmax.f32 %v529_v54, 0.0 }
 0x218   :  { %v604_v57 = vmax.f32 %v531_v56, 0.0  ;;  %v534_v58 = vpop.f32.mrb[12].mxu1 }
 0x219   :  { %v535_v59 = vadd.f32 %v534_v58, %v1385_v21  ;;  %v536_v60 = vpop.f32.mrb[13].mxu1 }
 0x21a   :  { %v537_v61 = vadd.f32 %v536_v60, %v1389_v45  ;;  %753 = vmatprep.mubr.f32.mxu0 %v604_v57 }
 0x21b   :  { %754 = vmatmul.mubr.f32.gmra.mrb[42].mxu0 %v603_v0  ;;  %v605_v1 = vmax.f32 %v535_v59, 0.0  ;;  %v1426_v0 = vld [vmem:[%s1462_s6] ss:$0 sm:$0xff]  ;;  %s1193_s6 = smov [#allocation10]  }
 0x21c   :  { %v606_v62 = vmax.f32 %v537_v61, 0.0  ;;  %v540_v63 = vpop.f32.mrb[14].mxu1  ;;  %s848_s30 = sshll.u32 %s1193_s6, 4  ;;  %s849_s30 = int_to_ptr.vmem [resolvable:$true] %s848_s30 }
 0x21d   :  { %v541_v2 = vadd.f32 %v540_v63, %v1385_v21  ;;  %v542_v3 = vpop.f32.mrb[15].mxu1  ;;  %s1154_s8 = scalar_lea.vmem %s849_s30, 16  ;;  %s1158_s9 = scalar_lea.vmem %s849_s30, 32 }
 0x21e   :  { %v543_v4 = vadd.f32 %v542_v3, %v1389_v45  ;;  %758 = vmatprep.mubr.f32.mxu0 %v606_v62  ;;  %p1155_p4 = scmp.ne.s32.totalorder %s849_s30, %s1154_s8  ;;  %p1159_p5 = scmp.lt.s32.totalorder %s849_s30, %s849_s30 }
 0x21f   :  { %759 = vmatmul.mubr.f32.gmra.mrb[44].mxu0 %v605_v1  ;;  %v607_v7 = vmax.f32 %v541_v2, 0.0  ;;  %p1160_p6 = scmp.lt.s32.totalorder %s1158_s9, %s1154_s8 }
 0x220   :  { %v608_v5 = vmax.f32 %v543_v4, 0.0  ;;  %v546_v6 = vpop.f32.mrb[16].mxu1 }
 0x221   :  { %v547_v8 = vadd.f32 %v546_v6, %v1385_v21  ;;  %v548_v9 = vpop.f32.mrb[17].mxu1  ;;  %p1161_p7 = por %p1160_p6, %p1159_p5 }
 0x222   :  { %v549_v10 = vadd.f32 %v548_v9, %v1389_v45  ;;  %763 = vmatprep.mubr.f32.mxu0 %v608_v5 }
 0x223   :  { %764 = vmatmul.mubr.f32.gmra.mrb[46].mxu0 %v607_v7  ;;  %v609_v13 = vmax.f32 %v547_v8, 0.0  ;;  %p1162_p8 = pnand %p1161_p7, %p1155_p4 }
 0x224   :  { %v610_v11 = vmax.f32 %v549_v10, 0.0  ;;  %v552_v12 = vpop.f32.mrb[18].mxu1 }
 0x225   :  { %v553_v14 = vadd.f32 %v552_v12, %v1385_v21  ;;  %v554_v15 = vpop.f32.mrb[19].mxu1 }
 0x226   :  { %v555_v16 = vadd.f32 %v554_v15, %v1389_v45  ;;  %768 = vmatprep.mubr.f32.mxu0 %v610_v11 }
 0x227   :  { %769 = vmatmul.mubr.f32.gmra.mrb[48].mxu0 %v609_v13  ;;  %v611_v19 = vmax.f32 %v553_v14, 0.0 }
 0x228   :  { %v612_v17 = vmax.f32 %v555_v16, 0.0  ;;  %v558_v18 = vpop.f32.mrb[20].mxu1 }
 0x229   :  { %v559_v20 = vadd.f32 %v558_v18, %v1385_v21  ;;  %v560_v22 = vpop.f32.mrb[21].mxu1 }
 0x22a   :  { %v561_v46 = vadd.f32 %v560_v22, %v1389_v45  ;;  %773 = vmatprep.mubr.f32.mxu0 %v612_v17 }
 0x22b   :  { %774 = vmatmul.mubr.f32.gmra.mrb[50].mxu0 %v611_v19  ;;  %v613_v25 = vmax.f32 %v559_v20, 0.0 }
 0x22c   :  { %v614_v23 = vmax.f32 %v561_v46, 0.0  ;;  %v564_v24 = vpop.f32.mrb[22].mxu1 }
 0x22d   :  { %v565_v26 = vadd.f32 %v564_v24, %v1385_v21  ;;  %v566_v27 = vpop.f32.mrb[23].mxu1 }
 0x22e   :  { %v567_v28 = vadd.f32 %v566_v27, %v1389_v45  ;;  %778 = vmatprep.mubr.f32.mxu0 %v614_v23 }
 0x22f   :  { %779 = vmatmul.mubr.f32.gmra.mrb[52].mxu0 %v613_v25  ;;  %v615_v42 = vmax.f32 %v565_v26, 0.0 }
 0x230   :  { %v616_v29 = vmax.f32 %v567_v28, 0.0  ;;  %v570_v30 = vpop.f32.mrb[24].mxu1 }
 0x231   :  { %v571_v41 = vadd.f32 %v570_v30, %v1385_v21  ;;  %v572_v44 = vpop.f32.mrb[25].mxu1 }
 0x232   :  { %v573_v31 = vadd.f32 %v572_v44, %v1389_v45  ;;  %783 = vmatprep.mubr.f32.mxu0 %v616_v29 }
 0x233   :  { %784 = vmatmul.mubr.f32.gmra.mrb[54].mxu0 %v615_v42  ;;  %v617_v34 = vmax.f32 %v571_v41, 0.0 }
 0x234   :  { %v618_v32 = vmax.f32 %v573_v31, 0.0  ;;  %v576_v33 = vpop.f32.mrb[26].mxu1 }
 0x235   :  { %v577_v35 = vadd.f32 %v576_v33, %v1385_v21  ;;  %v578_v36 = vpop.f32.mrb[27].mxu1 }
 0x236   :  { %v579_v37 = vadd.f32 %v578_v36, %v1389_v45  ;;  %788 = vmatprep.mubr.f32.mxu0 %v618_v32 }
 0x237   :  { %789 = vmatmul.mubr.f32.gmra.mrb[56].mxu0 %v617_v34  ;;  %v619_v40 = vmax.f32 %v577_v35, 0.0 }
 0x238   :  { %v620_v38 = vmax.f32 %v579_v37, 0.0  ;;  %v582_v39 = vpop.f32.mrb[28].mxu1 }
 0x239   :  { %v583_v43 = vadd.f32 %v582_v39, %v1385_v21  ;;  %v584_v47 = vpop.f32.mrb[29].mxu1 }
 0x23a   :  { %v585_v48 = vadd.f32 %v584_v47, %v1389_v45  ;;  %793 = vmatprep.mubr.f32.mxu0 %v620_v38 }
 0x23b   :  { %794 = vmatmul.mubr.f32.gmra.mrb[58].mxu0 %v619_v40  ;;  %v621_v51 = vmax.f32 %v583_v43, 0.0 }
 0x23c   :  { %v622_v49 = vmax.f32 %v585_v48, 0.0  ;;  %v588_v50 = vpop.f32.mrb[30].mxu1 }
 0x23d   :  { %v589_v52 = vadd.f32 %v588_v50, %v1385_v21  ;;  %v590_v53 = vpop.f32.mrb[31].mxu1 }
 0x23e   :  { %v591_v54 = vadd.f32 %v590_v53, %v1389_v45  ;;  %798 = vmatprep.mubr.f32.mxu0 %v622_v49 }
 0x23f   :  { %799 = vmatmul.mubr.f32.gmra.mrb[60].mxu0 %v621_v51  ;;  %v623_v56 = vmax.f32 %v589_v52, 0.0 }
 0x240   :  { %v624_v55 = vmax.f32 %v591_v54, 0.0 }
 0x242   :  { %803 = vmatprep.mubr.f32.mxu0 %v624_v55 }
 0x243   :  { %804 = vmatmul.mubr.f32.gmra.mrb[62].mxu0 %v623_v56 }
 0x2da   :  { %v908_v57 = vpop.f32.mrb[32].mxu0 }
 0x2db   :  { %v909_v58 = vpop.f32.mrb[33].mxu0 }
 0x2dc   :  { %v910_v59 = vadd.f32 %v909_v58, %v908_v57 }
 0x2de   :  { %v911_v60 = vpop.f32.mrb[34].mxu0  ;;  %v731_v21 = vadd.f32 %v910_v59, %v1426_v0 }
 0x2df   :  { %v912_v61 = vpop.f32.mrb[35].mxu0 }
 0x2e0   :  { %v913_v62 = vadd.f32 %v912_v61, %v911_v60  ;;  %809 = vxpose.xlu0.b32.start [1/16] (narrow) %v731_v21, 8 }
 0x2e2   :  { %v914_v45 = vpop.f32.mrb[36].mxu0  ;;  %v736_v63 = vadd.f32 %v913_v62, %v1426_v0 }
 0x2e3   :  { %v915_v1 = vpop.f32.mrb[37].mxu0 }
 0x2e4   :  { %v916_v2 = vadd.f32 %v915_v1, %v914_v45  ;;  %810 = vxpose.xlu0.b32.cont [2/16] (narrow) %v736_v63, 8 }
 0x2e6   :  { %v917_v3 = vpop.f32.mrb[38].mxu0  ;;  %v741_v4 = vadd.f32 %v916_v2, %v1426_v0 }
 0x2e7   :  { %v918_v5 = vpop.f32.mrb[39].mxu0 }
 0x2e8   :  { %v919_v6 = vadd.f32 %v918_v5, %v917_v3  ;;  %811 = vxpose.xlu0.b32.cont [3/16] (narrow) %v741_v4, 8 }
 0x2ea   :  { %v920_v7 = vpop.f32.mrb[40].mxu0  ;;  %v746_v8 = vadd.f32 %v919_v6, %v1426_v0 }
 0x2eb   :  { %v921_v9 = vpop.f32.mrb[41].mxu0 }
 0x2ec   :  { %v922_v10 = vadd.f32 %v921_v9, %v920_v7  ;;  %812 = vxpose.xlu0.b32.cont [4/16] (narrow) %v746_v8, 8 }
 0x2ee   :  { %v923_v11 = vpop.f32.mrb[42].mxu0  ;;  %v751_v12 = vadd.f32 %v922_v10, %v1426_v0 }
 0x2ef   :  { %v924_v13 = vpop.f32.mrb[43].mxu0 }
 0x2f0   :  { %v925_v14 = vadd.f32 %v924_v13, %v923_v11  ;;  %813 = vxpose.xlu0.b32.cont [5/16] (narrow) %v751_v12, 8 }
 0x2f2   :  { %v926_v15 = vpop.f32.mrb[44].mxu0  ;;  %v756_v16 = vadd.f32 %v925_v14, %v1426_v0 }
 0x2f3   :  { %v927_v17 = vpop.f32.mrb[45].mxu0 }
 0x2f4   :  { %v928_v18 = vadd.f32 %v927_v17, %v926_v15  ;;  %814 = vxpose.xlu0.b32.cont [6/16] (narrow) %v756_v16, 8 }
 0x2f6   :  { %v929_v19 = vpop.f32.mrb[46].mxu0  ;;  %v761_v20 = vadd.f32 %v928_v18, %v1426_v0 }
 0x2f7   :  { %v930_v22 = vpop.f32.mrb[47].mxu0 }
 0x2f8   :  { %v931_v46 = vadd.f32 %v930_v22, %v929_v19  ;;  %815 = vxpose.xlu0.b32.cont [7/16] (narrow) %v761_v20, 8 }
 0x2fa   :  { %v932_v23 = vpop.f32.mrb[48].mxu0  ;;  %v766_v24 = vadd.f32 %v931_v46, %v1426_v0 }
 0x2fb   :  { %v933_v25 = vpop.f32.mrb[49].mxu0 }
 0x2fc   :  { %v934_v26 = vadd.f32 %v933_v25, %v932_v23  ;;  %816 = vxpose.xlu0.b32.cont [8/16] (narrow) %v766_v24, 8 }
 0x2fe   :  { %v935_v27 = vpop.f32.mrb[50].mxu0  ;;  %v771_v28 = vadd.f32 %v934_v26, %v1426_v0 }
 0x2ff   :  { %v936_v29 = vpop.f32.mrb[51].mxu0 }
 0x300   :  { %v937_v30 = vadd.f32 %v936_v29, %v935_v27  ;;  %817 = vxpose.xlu0.b32.cont [9/16] (narrow) %v771_v28, 8 }
 0x302   :  { %v938_v42 = vpop.f32.mrb[52].mxu0  ;;  %v776_v41 = vadd.f32 %v937_v30, %v1426_v0 }
 0x303   :  { %v939_v44 = vpop.f32.mrb[53].mxu0 }
 0x304   :  { %v940_v31 = vadd.f32 %v939_v44, %v938_v42  ;;  %818 = vxpose.xlu0.b32.cont [10/16] (narrow) %v776_v41, 8 }
 0x306   :  { %v941_v32 = vpop.f32.mrb[54].mxu0  ;;  %v781_v33 = vadd.f32 %v940_v31, %v1426_v0 }
 0x307   :  { %v942_v34 = vpop.f32.mrb[55].mxu0 }
 0x308   :  { %v943_v35 = vadd.f32 %v942_v34, %v941_v32  ;;  %819 = vxpose.xlu0.b32.cont [11/16] (narrow) %v781_v33, 8 }
 0x30a   :  { %v944_v36 = vpop.f32.mrb[56].mxu0  ;;  %v786_v37 = vadd.f32 %v943_v35, %v1426_v0 }
 0x30b   :  { %v945_v38 = vpop.f32.mrb[57].mxu0 }
 0x30c   :  { %v946_v39 = vadd.f32 %v945_v38, %v944_v36  ;;  %820 = vxpose.xlu0.b32.cont [12/16] (narrow) %v786_v37, 8 }
 0x30e   :  { %v947_v40 = vpop.f32.mrb[58].mxu0  ;;  %v791_v43 = vadd.f32 %v946_v39, %v1426_v0 }
 0x30f   :  { %v948_v47 = vpop.f32.mrb[59].mxu0 }
 0x310   :  { %v949_v48 = vadd.f32 %v948_v47, %v947_v40  ;;  %821 = vxpose.xlu0.b32.cont [13/16] (narrow) %v791_v43, 8 }
 0x312   :  { %v950_v49 = vpop.f32.mrb[60].mxu0  ;;  %v796_v50 = vadd.f32 %v949_v48, %v1426_v0 }
 0x313   :  { %v951_v51 = vpop.f32.mrb[61].mxu0 }
 0x314   :  { %v952_v52 = vadd.f32 %v951_v51, %v950_v49  ;;  %822 = vxpose.xlu0.b32.cont [14/16] (narrow) %v796_v50, 8 }
 0x316   :  { %v953_v53 = vpop.f32.mrb[62].mxu0  ;;  %v801_v54 = vadd.f32 %v952_v52, %v1426_v0 }
 0x317   :  { %v954_v55 = vpop.f32.mrb[63].mxu0 }
 0x318   :  { %v955_v56 = vadd.f32 %v954_v55, %v953_v53  ;;  %823 = vxpose.xlu0.b32.cont [15/16] (narrow) %v801_v54, 8 }
 0x31a   :  { %v806_v57 = vadd.f32 %v955_v56, %v1426_v0 }
 0x31c   :  { %824 = vxpose.xlu0.b32.end [16/16] (narrow) %v806_v57, 8 }
 0x360   :  { %v825_v58 = vpop.trf.xlu0 }
 0x361   :  { %841 = vst [vmem:[#allocation10] sm:$0x1] %v825_v58 }
 0x362   :  { %1165 = shalt.err (!%p1162_p8)
}
 0x363   :  { %s1166_s14 = scalar_lea.hbm %s1463_s7, 16 }
 0x364   :  { %p1167_p9 = scmp.ne.s32.totalorder %s1463_s7, %s1166_s14  ;;  %p1170_p10 = scmp.lt.u32.totalorder %s1166_s14, %s1463_s7 }
 0x366   :  { %p1172_p11 = pnand %p1170_p10, %p1167_p9 }
 0x368   :  { %1175 = shalt.err (!%p1172_p11)
}
 0x369   :  { %851 = dma.vmem_to_hbm [thread:$0]  %s849_s30, 16, %s1463_s7, [#allocation4]  }
 0x36a   :  { %1182 = dma.done.wait [#allocation4], 16  }
 0x36b   :  { %1183 = vsyncadd [#allocation4], 4294967280 }
 0x36c   :  { %855 = vsyncpa [#allocation3], 1 }
 0x36d   :  { %856 = vsyncpa [#allocation6], 1 }
 0x36e   :  { %857 = vsyncpa [#allocation9], 1 }
 0x36f   :  { %858 = vsyncpa [#allocation4], 1 }

</bundles_post_ra>
